<compile_context>
chip_gen: v6e
topology: v6e:2x2x1
jax: 0.10.0
libtpu: 0.0.40
codegen_flags: <defaults>
</compile_context>

<pallas_src>
import functools

import jax
import jax.numpy as jnp
from jax.experimental import pallas as pl
from jax.experimental.pallas import tpu as pltpu

LANES = 128


def mlp_softmax_kernel(x_ref, w1_ref, b1_ref, w2_ref, b2_ref, w3_ref, b3_ref,
                       o_ref, *, out_dim):
    # ----- input_layer + ReLU -----
    h1 = jnp.dot(x_ref[...], w1_ref[...], preferred_element_type=jnp.float32)
    h1 = jnp.maximum(h1 + b1_ref[...], 0.0)

    # ----- hidden_layer1 + ReLU -----
    h2 = jnp.dot(h1, w2_ref[...], preferred_element_type=jnp.float32)
    h2 = jnp.maximum(h2 + b2_ref[...], 0.0)

    # ----- output_layer (lane-padded to 128 in VMEM only) -----
    # Padded bias columns hold -1e30, so padded lanes contribute exp(~-1e30)=0
    # to the softmax without any iota/where masking in the kernel.
    logits = jnp.dot(h2, w3_ref[...], preferred_element_type=jnp.float32)
    logits = logits + b3_ref[...]

    # ----- numerically-stable softmax along the feature axis -----
    m = jnp.max(logits, axis=1, keepdims=True)
    e = jnp.exp(logits - m)
    denom = jnp.sum(e, axis=1, keepdims=True)
    probs = e / denom  # exact divide -> rows sum to 1 up to fp rounding

    # Store only the valid columns: narrow HBM writeback.
    o_ref[...] = probs[:, :out_dim].astype(o_ref.dtype)


def neural_network_classification_forward(x, params, *, tb=1024):
    """x: [B, input_dim] float32; params: dict of transposed weights/biases."""
    w1, b1, w2, b2, w3, b3 = (
        params["w1"], params["b1"], params["w2"],
        params["b2"], params["w3"], params["b3"],
    )
    B, in_dim = x.shape
    out_dim = w3.shape[1]

    # --- pad the logit dimension to 128 lanes for the in-kernel softmax ---
    out_pad = ((out_dim + LANES - 1) // LANES) * LANES
    w3p = jnp.pad(w3, ((0, 0), (0, out_pad - out_dim)))  # padded cols are 0
    # Fold the softmax lane mask into the bias: padded lanes get -1e30.
    b3p = jnp.pad(b3, ((0, 0), (0, out_pad - out_dim)), constant_values=-1e30)

    # --- batch tile: multiple of 8, capped at tb, and at most ceil(B/2) so the
    #     grid keeps >= 2 steps (v7x can split the batch across its 2 TCs) ---
    half = -(-B // 2)
    tb_eff = min(tb, ((half + 7) // 8) * 8)
    b_pad = ((B + tb_eff - 1) // tb_eff) * tb_eff
    xp = jnp.pad(x, ((0, b_pad - B), (0, 0))) if b_pad != B else x

    grid = (b_pad // tb_eff,)

    # Weights/biases: same block every grid step -> stay VMEM-resident.
    resident = lambda a: pl.BlockSpec(a.shape, lambda i: (0,) * a.ndim)

    kernel = functools.partial(mlp_softmax_kernel, out_dim=out_dim)

    cost = pl.CostEstimate(
        flops=2 * b_pad * (in_dim * 32 + 32 * 64 + 64 * out_pad),
        transcendentals=b_pad * out_pad,
        bytes_accessed=4 * (b_pad * (in_dim + out_dim)
                            + in_dim * 32 + 32
                            + 32 * 64 + 64
                            + 64 * out_pad + out_pad),
    )

    out = pl.pallas_call(
        kernel,
        out_shape=jax.ShapeDtypeStruct((b_pad, out_dim), jnp.float32),
        grid=grid,
        in_specs=[
            pl.BlockSpec((tb_eff, in_dim), lambda i: (i, 0)),  # streamed x tiles
            resident(w1), resident(b1),
            resident(w2), resident(b2),
            resident(w3p), resident(b3p),
        ],
        out_specs=pl.BlockSpec((tb_eff, out_dim), lambda i: (i, 0)),
        compiler_params=pltpu.CompilerParams(
            dimension_semantics=("parallel",)),
        cost_estimate=cost,
    )(xp, w1, b1, w2, b2, w3p, b3p)

    # Only the batch pad remains (output is already narrow in the lane dim).
    return out if b_pad == B else out[:B]


def init_params(key, input_dim, output_dim):
    """Deterministic init matching PyTorch Linear shapes (stored transposed)."""
    ks = jax.random.split(key, 6)

    def linear(kw, kb, fan_in, fan_out):
        # PyTorch default: U(-1/sqrt(fan_in), 1/sqrt(fan_in))
        bound = 1.0 / jnp.sqrt(jnp.float32(fan_in))
        w = jax.random.uniform(kw, (fan_in, fan_out), jnp.float32, -bound, bound)
        b = jax.random.uniform(kb, (1, fan_out), jnp.float32, -bound, bound)
        return w, b

    w1, b1 = linear(ks[0], ks[1], input_dim, 32)
    w2, b2 = linear(ks[2], ks[3], 32, 64)
    w3, b3 = linear(ks[4], ks[5], 64, output_dim)
    return {"w1": w1, "b1": b1, "w2": w2, "b2": b2, "w3": w3, "b3": b3}


if __name__ == "__main__":
    input_dim, output_dim = 16, 4

    key = jax.random.PRNGKey(0)
    kx, kp = jax.random.split(key)
    params = init_params(kp, input_dim, output_dim)

    # Pure-JAX reference.
    def ref(x, p):
        h = jnp.maximum(x @ p["w1"] + p["b1"], 0.0)
        h = jnp.maximum(h @ p["w2"] + p["b2"], 0.0)
        return jax.nn.softmax(h @ p["w3"] + p["b3"], axis=1)

    # batch=64 exercises the aligned multi-step grid; batch=50 exercises the
    # ragged-batch padding + slice path.
    for batch in (64, 50):
        x = jax.random.normal(jax.random.fold_in(kx, batch),
                              (batch, input_dim), dtype=jnp.float32)
        out = neural_network_classification_forward(x, params)
        out = jax.block_until_ready(out)

        expected = ref(x, params)
        assert out.shape == (batch, output_dim)
        assert jnp.allclose(out, expected, atol=1e-4, rtol=1e-4)
        # Rows are valid probability distributions (exact divide in softmax).
        assert jnp.allclose(jnp.sum(out, axis=1), 1.0, atol=1e-4)

    print("KERNEL_OK")
</pallas_src>

<mosaic_0001>
module attributes {stable_mosaic.version = 11 : i64} {
  func.func @mlp_softmax_kernel(%arg0: i32, %arg1: memref<32x16xf32, #tpu.memory_space<vmem>>, %arg2: memref<16x32xf32, #tpu.memory_space<vmem>>, %arg3: memref<1x32xf32, #tpu.memory_space<vmem>>, %arg4: memref<32x64xf32, #tpu.memory_space<vmem>>, %arg5: memref<1x64xf32, #tpu.memory_space<vmem>>, %arg6: memref<64x128xf32, #tpu.memory_space<vmem>>, %arg7: memref<1x128xf32, #tpu.memory_space<vmem>>, %arg8: memref<32x4xf32, #tpu.memory_space<vmem>>) attributes {dimension_semantics = [#tpu.dimension_semantics<parallel>], iteration_bounds = array<i64: 2>, scalar_prefetch = 0 : i64, scratch_operands = 0 : i64, tpu.core_type = #tpu.core_type<tc>, window_params = [{transform_indices = @transform_0, window_bounds = array<i64: 32, 16>}, {pipeline_mode = #tpu.pipeline_mode<synchronous>, transform_indices = @transform_1, window_bounds = array<i64: 16, 32>}, {pipeline_mode = #tpu.pipeline_mode<synchronous>, transform_indices = @transform_2, window_bounds = array<i64: 1, 32>}, {pipeline_mode = #tpu.pipeline_mode<synchronous>, transform_indices = @transform_3, window_bounds = array<i64: 32, 64>}, {pipeline_mode = #tpu.pipeline_mode<synchronous>, transform_indices = @transform_4, window_bounds = array<i64: 1, 64>}, {pipeline_mode = #tpu.pipeline_mode<synchronous>, transform_indices = @transform_5, window_bounds = array<i64: 64, 128>}, {pipeline_mode = #tpu.pipeline_mode<synchronous>, transform_indices = @transform_6, window_bounds = array<i64: 1, 128>}, {transform_indices = @transform_7, window_bounds = array<i64: 32, 4>}]} {
    %c0 = arith.constant 0 : index
    %c0_0 = arith.constant 0 : index
    %0 = vector.load %arg1[%c0, %c0_0] : memref<32x16xf32, #tpu.memory_space<vmem>>, vector<32x16xf32>
    %c0_1 = arith.constant 0 : index
    %c0_2 = arith.constant 0 : index
    %1 = vector.load %arg2[%c0_1, %c0_2] : memref<16x32xf32, #tpu.memory_space<vmem>>, vector<16x32xf32>
    %cst = arith.constant dense<0.000000e+00> : vector<32x32xf32>
    %2 = tpu.matmul %0, %1, %cst {dimension_numbers = #tpu.dot_dimension_numbers<[1], [0], [0], [1], [0, 0, 1, 1], [], []>} : vector<32x16xf32>, vector<16x32xf32>, vector<32x32xf32> -> vector<32x32xf32>
    %c0_3 = arith.constant 0 : index
    %c0_4 = arith.constant 0 : index
    %3 = vector.load %arg3[%c0_3, %c0_4] : memref<1x32xf32, #tpu.memory_space<vmem>>, vector<1x32xf32>
    %4 = vector.broadcast %3 : vector<1x32xf32> to vector<32x32xf32>
    %5 = arith.addf %2, %4 : vector<32x32xf32>
    %cst_5 = arith.constant 0.000000e+00 : f32
    %6 = vector.broadcast %cst_5 : f32 to vector<32x32xf32>
    %7 = arith.maximumf %5, %6 : vector<32x32xf32>
    %c0_6 = arith.constant 0 : index
    %c0_7 = arith.constant 0 : index
    %8 = vector.load %arg4[%c0_6, %c0_7] : memref<32x64xf32, #tpu.memory_space<vmem>>, vector<32x64xf32>
    %cst_8 = arith.constant dense<0.000000e+00> : vector<32x64xf32>
    %9 = tpu.matmul %7, %8, %cst_8 {dimension_numbers = #tpu.dot_dimension_numbers<[1], [0], [0], [1], [0, 0, 1, 1], [], []>} : vector<32x32xf32>, vector<32x64xf32>, vector<32x64xf32> -> vector<32x64xf32>
    %c0_9 = arith.constant 0 : index
    %c0_10 = arith.constant 0 : index
    %10 = vector.load %arg5[%c0_9, %c0_10] : memref<1x64xf32, #tpu.memory_space<vmem>>, vector<1x64xf32>
    %11 = vector.broadcast %10 : vector<1x64xf32> to vector<32x64xf32>
    %12 = arith.addf %9, %11 : vector<32x64xf32>
    %cst_11 = arith.constant 0.000000e+00 : f32
    %13 = vector.broadcast %cst_11 : f32 to vector<32x64xf32>
    %14 = arith.maximumf %12, %13 : vector<32x64xf32>
    %c0_12 = arith.constant 0 : index
    %c0_13 = arith.constant 0 : index
    %15 = vector.load %arg6[%c0_12, %c0_13] : memref<64x128xf32, #tpu.memory_space<vmem>>, vector<64x128xf32>
    %cst_14 = arith.constant dense<0.000000e+00> : vector<32x128xf32>
    %16 = tpu.matmul %14, %15, %cst_14 {dimension_numbers = #tpu.dot_dimension_numbers<[1], [0], [0], [1], [0, 0, 1, 1], [], []>} : vector<32x64xf32>, vector<64x128xf32>, vector<32x128xf32> -> vector<32x128xf32>
    %c0_15 = arith.constant 0 : index
    %c0_16 = arith.constant 0 : index
    %17 = vector.load %arg7[%c0_15, %c0_16] : memref<1x128xf32, #tpu.memory_space<vmem>>, vector<1x128xf32>
    %18 = vector.broadcast %17 : vector<1x128xf32> to vector<32x128xf32>
    %19 = arith.addf %16, %18 : vector<32x128xf32>
    %cst_17 = arith.constant dense<0xFF800000> : vector<32xf32>
    %20 = vector.multi_reduction <maximumf>, %19, %cst_17 [1] : vector<32x128xf32> to vector<32xf32>
    %21 = vector.shape_cast %20 : vector<32xf32> to vector<32x1xf32>
    %22 = vector.broadcast %21 : vector<32x1xf32> to vector<32x128xf32>
    %23 = arith.subf %19, %22 : vector<32x128xf32>
    %24 = math.exp %23 : vector<32x128xf32>
    %cst_18 = arith.constant dense<0.000000e+00> : vector<32xf32>
    %25 = vector.multi_reduction <add>, %24, %cst_18 [1] : vector<32x128xf32> to vector<32xf32>
    %26 = vector.shape_cast %25 : vector<32xf32> to vector<32x1xf32>
    %27 = vector.broadcast %26 : vector<32x1xf32> to vector<32x128xf32>
    %28 = arith.divf %24, %27 : vector<32x128xf32>
    %29 = vector.extract_strided_slice %28 {offsets = [0, 0], sizes = [32, 4], strides = [1, 1]} : vector<32x128xf32> to vector<32x4xf32>
    %c0_19 = arith.constant 0 : index
    %c0_20 = arith.constant 0 : index
    %30 = vector.load %arg8[%c0_19, %c0_20] : memref<32x4xf32, #tpu.memory_space<vmem>>, vector<32x4xf32>
    tpu.vector_store %arg8[%c0_19, %c0_20], %29 {strides = array<i32>} : memref<32x4xf32, #tpu.memory_space<vmem>>, vector<32x4xf32>,
    return
  }
  func.func @transform_0(%arg0: i32) -> (i32, i32) {
    %c0_i32 = arith.constant 0 : i32
    %c0_i32_0 = arith.constant 0 : i32
    return %arg0, %c0_i32 : i32, i32
  }
  func.func @transform_1(%arg0: i32) -> (i32, i32) {
    %c0_i32 = arith.constant 0 : i32
    %c0_i32_0 = arith.constant 0 : i32
    %c0_i32_1 = arith.constant 0 : i32
    return %c0_i32, %c0_i32_0 : i32, i32
  }
  func.func @transform_2(%arg0: i32) -> (i32, i32) {
    %c0_i32 = arith.constant 0 : i32
    %c0_i32_0 = arith.constant 0 : i32
    %c0_i32_1 = arith.constant 0 : i32
    return %c0_i32, %c0_i32_0 : i32, i32
  }
  func.func @transform_3(%arg0: i32) -> (i32, i32) {
    %c0_i32 = arith.constant 0 : i32
    %c0_i32_0 = arith.constant 0 : i32
    %c0_i32_1 = arith.constant 0 : i32
    return %c0_i32, %c0_i32_0 : i32, i32
  }
  func.func @transform_4(%arg0: i32) -> (i32, i32) {
    %c0_i32 = arith.constant 0 : i32
    %c0_i32_0 = arith.constant 0 : i32
    %c0_i32_1 = arith.constant 0 : i32
    return %c0_i32, %c0_i32_0 : i32, i32
  }
  func.func @transform_5(%arg0: i32) -> (i32, i32) {
    %c0_i32 = arith.constant 0 : i32
    %c0_i32_0 = arith.constant 0 : i32
    %c0_i32_1 = arith.constant 0 : i32
    return %c0_i32, %c0_i32_0 : i32, i32
  }
  func.func @transform_6(%arg0: i32) -> (i32, i32) {
    %c0_i32 = arith.constant 0 : i32
    %c0_i32_0 = arith.constant 0 : i32
    %c0_i32_1 = arith.constant 0 : i32
    return %c0_i32, %c0_i32_0 : i32, i32
  }
  func.func @transform_7(%arg0: i32) -> (i32, i32) {
    %c0_i32 = arith.constant 0 : i32
    %c0_i32_0 = arith.constant 0 : i32
    return %arg0, %c0_i32 : i32, i32
  }
}

</mosaic_0001>

<bundles_post_ra>
// kernel: tpu_custom_call.1
= control target key start
LH: loop header
LB: loop body
LE: loop exit
PB: predicated region body
PF: predicated region fallthrough
CT: control target
= control target key end

     0   :  { %12 = vsyncpa [#allocation3], 0  ;;  %s965_s24 = smov 0   ;;  %s1053_s0 = inlined_call_operand.vmem [shape: f32[64,16], index: 0, kind: input, shape index: {}]   ;;  %s1054_s1 = inlined_call_operand.vmem [shape: f32[16,32], index: 1, kind: input, shape index: {}]   ;;  %s1055_s2 = inlined_call_operand.vmem [shape: f32[1,32], index: 2, kind: input, shape index: {}]   ;;  %s1056_s3 = inlined_call_operand.hbm [shape: f32[32,64], index: 3, kind: input, shape index: {}]   ;;  %s1057_s4 = inlined_call_operand.vmem [shape: f32[1,64], index: 4, kind: input, shape index: {}]   ;;  %s1058_s5 = inlined_call_operand.vmem [shape: f32[64,128], index: 5, kind: input, shape index: {}]   ;;  %s1059_s6 = inlined_call_operand.vmem [shape: f32[1,128], index: 6, kind: input, shape index: {}]   ;;  %s1060_s7 = inlined_call_operand.vmem [shape: f32[64,4], index: 7, kind: output, shape index: {}]  }
   0x1 LB: > { %s747_s25 = sadd.s32 4294967295, %s920_s24   ;;  %p749_p0 = scmp.ge.s32.totalorder %s920_s24, 1  ;;  %s920_s24 = sphi %s965_s24, %s18_s24  }
   0x2   : > { %p201_p1 = scmp.lt.s32.totalorder %s920_s24, 3  ;;  %s922_s26 = smov [#allocation2]  }
   0x3   : > { %s219_s27 = sshll.u32 %s922_s26, 4  ;;  %p977_p3 = scmp.eq.s32.totalorder %s747_s25, 0  ;;  %s220_s27 = int_to_ptr.vmem [resolvable:$true] %s219_s27 }
   0x4   : > { %p973_p2 = pnand %p749_p0, %p201_p1  ;;  %s895_s30 = scalar_lea.vmem %s220_s27, 512 }
   0x5   : > { %p896_p7 = scmp.ne.s32.totalorder %s220_s27, %s895_s30  ;;  %p903_p10 = scmp.lt.s32.totalorder %s220_s27, %s220_s27 }
   0x6   : > { %p851_p4 = pneg %p973_p2  ;;  %p904_p11 = scmp.lt.s32.totalorder %s895_s30, %s895_s30 }
   0x8   : > { %p852_p5 = pnand %p977_p3, %p851_p4  ;;  %p905_p12 = por %p904_p11, %p903_p10 }
   0xa   : > { %p886_p6 = pneg %p852_p5 }
   0xc   : > { %p898_p8 = pnand %p896_p7, %p886_p6 }
   0xe   : > { %p899_p9 = pneg %p898_p8 }
  0x10   : > { %p906_p13 = pnand %p905_p12, %p899_p9 }
  0x12   : > { %909 = shalt.err (!%p906_p13)
}
  0x13   : > { %s923_s8 = smov 128   ;;  %s924_s9 = smov 8  }
  0x14   : > { %854 = dma.hbm_to_vmem [thread:$0]  (!%p852_p5), %s1056_s3, 512, %s220_s27, [#allocation3], %s923_s8, %s923_s8, %s924_s9  }
  0x15   : > { %253 = sbr.rel (%p973_p2) target bundleno = 952 (0x3b8), region = 48 }
  0x1a   : > { %915 = dma.done.wait (%p977_p3), [#allocation3], 512  }
  0x1b   : > { %917 = vsyncadd (%p977_p3), [#allocation3], 4294966784  ;;  %s754_s12 = sshll.u32 %s747_s25, 2  ;;  %vm310_vm0 = vcmask 130048   ;;  %v302_v0 = vld [vmem:[%s1054_s1 + $0x8] sm:$0xff]  ;;  %v301_v1 = vld [vmem:[%s1054_s1] sm:$0xff] }
  0x1c   : > { %p286_p0 = scmp.lt.s32.totalorder %s754_s12, 7  ;;  %801 = vmatprep.subr.mxu1 %v302_v0  ;;  %v415_v4 = vld [vmem:[#allocation2 + $0x18] sm:$0xff]  ;;  %v414_v7 = vld [vmem:[#allocation2 + $0x10] sm:$0xff]  ;;  %v413_v8 = vld [vmem:[#allocation2 + $0x8] sm:$0xff]  ;;  %vm423_vm1 = vcmask 261120   ;;  %vm540_vm2 = vcmask 523264  }
  0x1d   : > { %802 = vmatpush3.msra.mxu1 %v302_v0  ;;  %v412_v9 = vld [vmem:[#allocation2] sm:$0xff]  ;;  %v532_v10 = vld [vmem:[%s1058_s5 + $0x38] sm:$0xff]  ;;  %v531_v11 = vld [vmem:[%s1058_s5 + $0x30] sm:$0xff]  ;;  %vm674_vm3 = vcmask 31744  }
  0x1e   : > { %s1064_s12 = smov (!%p286_p0, %s754_s12), 7  ;;  %803 = vmatprep.subr.mxu1 %v301_v1  ;;  %825 = vmatprep.subr.mxu0 %v532_v10  ;;  %v530_v12 = vld [vmem:[%s1058_s5 + $0x28] sm:$0xff]  ;;  %v529_v13 = vld [vmem:[%s1058_s5 + $0x20] sm:$0xff]  ;;  %v528_v27 = vld [vmem:[%s1058_s5 + $0x18] sm:$0xff] }
  0x1f   : > { %s755_s13 = sshll.u32 %s1064_s12, 3  ;;  %804 = vmatpush3.msra.mxu1 %v301_v1  ;;  %826 = vmatpush3.msra.mxu0 %v532_v10  ;;  %v758_v14 = vld [vmem:[%s1055_s2] ss:$0 sm:$0xff]  ;;  %v527_v28 = vld [vmem:[%s1058_s5 + $0x10] sm:$0xff]  ;;  %v526_v29 = vld [vmem:[%s1058_s5 + $0x8] sm:$0xff] }
  0x20   : > { %s289_s16 = scalar_lea.vmem %s1053_s0, %s755_s13  ;;  %811 = vmatprep.subr.mxu1 %v415_v4  ;;  %827 = vmatprep.subr.mxu0 %v531_v11  ;;  %v525_v30 = vld [vmem:[%s1058_s5] sm:$0xff]  ;;  %s295_s26 = scalar_lea.vmem %s1060_s7, %s755_s13 }
  0x21   : > { %v297_v2 = vld [vmem:[%s289_s16] sm:$0xff]  ;;  %v298_v3 = vld [vmem:[%s289_s16 + $0x8] sm:$0xff]  ;;  %v299_v5 = vld [vmem:[%s289_s16 + $0x10] sm:$0xff]  ;;  %828 = vmatpush3.msra.mxu0 %v531_v11 }
  0x22   : > { %805 = vmatprep.mubr.msk.f32.mxu1 %vm310_vm0, %v297_v2  ;;  %v300_v6 = vld [vmem:[%s289_s16 + $0x18] sm:$0xff]  ;;  %829 = vmatprep.subr.mxu0 %v530_v12  ;;  %v763_v31 = vld [vmem:[%s1057_s4] ss:$0 sm:$0xff] }
  0x23   : > { %806 = vmatmul.mubr.msk.f32.vlgmr.msra.gmra.mxu1 %vm310_vm0, %v298_v3  ;;  %830 = vmatpush3.msra.mxu0 %v530_v12  ;;  %v768_v45 = vld [vmem:[%s1059_s6] ss:$0 sm:$0xff] }
  0x24   : > { %808 = vmatprep.mubr.msk.f32.mxu1 %vm310_vm0, %v299_v5  ;;  %812 = vmatpush3.msra.mxu1 %v415_v4 }
  0x25   : > { %813 = vmatprep.subr.mxu1 %v414_v7  ;;  %831 = vmatprep.subr.mxu0 %v529_v13 }
  0x26   : > { %814 = vmatpush3.msra.mxu1 %v414_v7  ;;  %832 = vmatpush3.msra.mxu0 %v529_v13 }
  0x27   : > { %809 = vmatmul.mubr.msk.f32.gmra.mxu1 %vm310_vm0, %v300_v6  ;;  %815 = vmatprep.subr.mxu1 %v413_v8 }
  0x28   : > { %816 = vmatpush3.msra.mxu1 %v413_v8  ;;  %833 = vmatprep.subr.mxu0 %v528_v27 }
  0x29   : > { %817 = vmatprep.subr.mxu1 %v412_v9  ;;  %834 = vmatpush3.msra.mxu0 %v528_v27 }
  0x2a   : > { %818 = vmatpush3.msra.mxu1 %v412_v9  ;;  %835 = vmatprep.subr.mxu0 %v527_v28 }
  0x2b   : > { %836 = vmatpush3.msra.mxu0 %v527_v28 }
  0x2c   : > { %837 = vmatprep.subr.mxu0 %v526_v29 }
  0x2d   : > { %838 = vmatpush3.msra.mxu0 %v526_v29 }
  0x2e   : > { %839 = vmatprep.subr.mxu0 %v525_v30 }
  0x2f   : > { %840 = vmatpush3.msra.mxu0 %v525_v30 }
  0xe3   : > { %v807_v15 = vpop.f32.mrf.mxu1 }
  0xe4   : > { %v395_v16 = vadd.f32 %v807_v15, %v758_v14 }
  0xe5   : > { %v389_v17 = vpop.f32.mrf.mxu1 }
  0xe6   : > { %v390_v18 = vadd.f32 %v758_v14, %v389_v17  ;;  %v409_v21 = vmax.f32 %v395_v16, 0.0 }
  0xe7   : > { %v810_v19 = vpop.f32.mrf.mxu1 }
  0xe8   : > { %v408_v20 = vmax.f32 %v390_v18, 0.0  ;;  %v405_v22 = vadd.f32 %v810_v19, %v758_v14 }
  0xe9   : > { %v399_v23 = vpop.f32.mrf.mxu1 }
  0xea   : > { %v400_v24 = vadd.f32 %v758_v14, %v399_v23  ;;  %819 = vmatprep.mubr.msk.f32.mxu1 %vm423_vm1, %v408_v20  ;;  %v411_v26 = vmax.f32 %v405_v22, 0.0 }
  0xeb   : > { %820 = vmatmul.mubr.msk.f32.vlgmr.msra.gmra.mxu1 %vm423_vm1, %v409_v21 }
  0xec   : > { %v410_v25 = vmax.f32 %v400_v24, 0.0 }
  0xee   : > { %822 = vmatprep.mubr.msk.f32.mxu1 %vm423_vm1, %v410_v25 }
  0xef   : > { %823 = vmatmul.mubr.msk.f32.gmra.mxu1 %vm423_vm1, %v411_v26 }
 0x1ab   : > { %v821_v32 = vpop.f32.mrf.mxu1 }
 0x1ac   : > { %v508_v33 = vadd.f32 %v821_v32, %v763_v31 }
 0x1ad   : > { %v502_v34 = vpop.f32.mrf.mxu1 }
 0x1ae   : > { %v503_v35 = vadd.f32 %v763_v31, %v502_v34  ;;  %v522_v38 = vmax.f32 %v508_v33, 0.0 }
 0x1af   : > { %v824_v36 = vpop.f32.mrf.mxu1 }
 0x1b0   : > { %v521_v37 = vmax.f32 %v503_v35, 0.0  ;;  %v518_v39 = vadd.f32 %v824_v36, %v763_v31 }
 0x1b1   : > { %v512_v40 = vpop.f32.mrf.mxu1 }
 0x1b2   : > { %v513_v41 = vadd.f32 %v763_v31, %v512_v40  ;;  %841 = vmatprep.mubr.msk.f32.mxu0 %vm540_vm2, %v521_v37  ;;  %v524_v43 = vmax.f32 %v518_v39, 0.0 }
 0x1b3   : > { %842 = vmatmul.mubr.msk.f32.vlgmr.msra.gmra.mxu0 %vm540_vm2, %v522_v38 }
 0x1b4   : > { %v523_v42 = vmax.f32 %v513_v41, 0.0 }
 0x1b6   : > { %844 = vmatprep.mubr.msk.f32.mxu0 %vm540_vm2, %v523_v42 }
 0x1b7   : > { %845 = vmatmul.mubr.msk.f32.gmra.mxu0 %vm540_vm2, %v524_v43 }
 0x273   : > { %v843_v44 = vpop.f32.mrf.mxu0 }
 0x274   : > { %v625_v50 = vadd.f32 %v843_v44, %v768_v45 }
 0x275   : > { %v619_v46 = vpop.f32.mrf.mxu0 }
 0x276   : > { %v620_v47 = vadd.f32 %v768_v45, %v619_v46 }
 0x277   : > { %v846_v48 = vpop.f32.mrf.mxu0 }
 0x278   : > { %638 = vmax.xlane.f32.xlu0 %v620_v47  ;;  %v635_v52 = vadd.f32 %v846_v48, %v768_v45 }
 0x279   : > { %v629_v49 = vpop.f32.mrf.mxu0 }
 0x27a   : > { %v630_v51 = vadd.f32 %v768_v45, %v629_v49 }
 0x27c   : > { %642 = vmax.xlane.f32.xlu1 %v630_v51  ;;  %640 = vmax.xlane.f32.xlu0 %v625_v50 }
 0x280   : > { %644 = vmax.xlane.f32.xlu1 %v635_v52 }
 0x301   : > { %v639_v53 = vpop.xlane.xlu0 %638 }
 0x302   : > { %v646_v54 = vsub.f32 %v620_v47, %v639_v53 }
 0x304   : > { %v650_v55 = vmul.f32 1.442695, %v646_v54 }
 0x305   : > { %v643_v56 = vpop.xlane.xlu1 %642  ;;  %v641_v57 = vpop.xlane.xlu0 %640 }
 0x306   : > { %868 = vpow2.f32 %v650_v55  ;;  %v648_v58 = vsub.f32 %v630_v51, %v643_v56  ;;  %v647_v59 = vsub.f32 %v625_v50, %v641_v57 }
 0x308   : > { %v654_v60 = vmul.f32 1.442695, %v648_v58  ;;  %v652_v61 = vmul.f32 1.442695, %v647_v59 }
 0x309   : > { %v645_v62 = vpop.xlane.xlu1 %644 }
 0x30a   : > { %870 = vpow2.f32 %v654_v60  ;;  %v649_v63 = vsub.f32 %v635_v52, %v645_v62 }
 0x30b   : > { %872 = vpow2.f32 %v652_v61 }
 0x30c   : > { %v656_v0 = vmul.f32 1.442695, %v649_v63 }
 0x30e   : > { %874 = vpow2.f32 %v656_v0 }
 0x313   : > { %v869_v1 = vpop.eup %868 }
 0x314   : > { %658 = vadd.xlane.f32.xlu0 %v869_v1 }
 0x317   : > { %v871_v2 = vpop.eup %870 }
 0x318   : > { %v873_v3 = vpop.eup %872  ;;  %662 = vadd.xlane.f32.xlu0 %v871_v2 }
 0x319   : > { %660 = vadd.xlane.f32.xlu1 %v873_v3 }
 0x31b   : > { %v875_v4 = vpop.eup %874 }
 0x31d   : > { %664 = vadd.xlane.f32.xlu1 %v875_v4 }
 0x39d   : > { %v659_v5 = vpop.xlane.xlu0 %658 }
 0x39e   : > { %876 = vrcp.f32 %v659_v5 }
 0x3a1   : > { %v663_v6 = vpop.xlane.xlu0 %662 }
 0x3a2   : > { %v661_v7 = vpop.xlane.xlu1 %660  ;;  %878 = vrcp.f32 %v663_v6 }
 0x3a3   : > { %880 = vrcp.f32 %v661_v7 }
 0x3a6   : > { %v665_v8 = vpop.xlane.xlu1 %664 }
 0x3a7   : > { %882 = vrcp.f32 %v665_v8 }
 0x3ab   : > { %v877_v9 = vpop.eup %876 }
 0x3ac   : > { %v667_v10 = vmul.f32 %v877_v9, %v869_v1 }
 0x3ae   : > { %675 = vst.msk [vmem:[%s295_s26] sm:$0xff] %vm674_vm3, %v667_v10 }
 0x3af   : > { %v879_v11 = vpop.eup %878 }
 0x3b0   : > { %v881_v12 = vpop.eup %880  ;;  %v671_v13 = vmul.f32 %v879_v11, %v871_v2 }
 0x3b1   : > { %v669_v14 = vmul.f32 %v881_v12, %v873_v3 }
 0x3b2   : > { %677 = vst.msk [vmem:[%s295_s26 + $0x10] sm:$0xff] %vm674_vm3, %v671_v13 }
 0x3b3   : > { %676 = vst.msk [vmem:[%s295_s26 + $0x8] sm:$0xff] %vm674_vm3, %v669_v14 }
 0x3b4   : > { %v883_v15 = vpop.eup %882 }
 0x3b5   : > { %v673_v16 = vmul.f32 %v883_v15, %v875_v4 }
 0x3b7   : > { %678 = vst.msk [vmem:[%s295_s26 + $0x18] sm:$0xff] %vm674_vm3, %v673_v16 }
 0x3b8 PF: > { %s18_s24 = sadd.s32 1, %s920_s24  }
 0x3b9   : > { %p15_p1 = scmp.ge.s32.totalorder %s18_s24, 4  }
 0x3bb   :  { %17 = sbr.rel (!%p15_p1) target bundleno = 1 (0x1), region = 83 }
 0x3c0   :  { %701 = vsyncpa [#allocation3], 1 }
 0x3c1   :  { %703 = vsyncpa [#allocation3 + $0x1], 1 }

</bundles_post_ra>
